<compile_context>
chip_gen: v6e
topology: v6e:2x2x1
jax: 0.10.0
libtpu: 0.0.40
codegen_flags: <defaults>
</compile_context>

<pallas_src>
import jax
import jax.numpy as jnp
from jax import lax
from jax.experimental import pallas as pl
from jax.experimental.pallas import tpu as pltpu


STATE_DIM = 6
CONTROL_DIM = 2
NIN = STATE_DIM + CONTROL_DIM - 3       # 5
NOUT = STATE_DIM - 3                    # 3
HIDDEN = 32

# Packed parameter blob (P_ROWS, 32). Every section starts on a 16-row boundary
# (the native bf16 sublane tile), so all in-kernel slices are tile-aligned loads.
R_W1X = 0     # rows 0:6   : W1 rows for x columns (rows 0:3 zero for X,Y,phi; 3:6 = v_x,v_y,r)
R_W1U = 16    # rows 16:18 : W1 rows for u0,u1
R_B1 = 32     # row 32     : b1 (1, 32)
R_W2 = 48     # rows 48:80 : W2 (32, 32)
R_B2 = 80     # row 80     : b2 (1, 32)
R_W3 = 96     # rows 96:128, cols 0:6 : W3 with real outputs in cols 3:6 (cols 0:3 zero)
R_B3 = 128    # row 128,     cols 0:6 : b3 (real values in cols 3:6)
P_ROWS = 144
P_COLS = HIDDEN


def _round_up(n, m):
    return ((n + m - 1) // m) * m


def neural_dyn6_kernel(x_ref, u_ref, p_ref, o_ref):
    """Fused kinematics + MLP residual for one batch tile.

    x_ref : (TB, 6)  f32   [X, Y, phi, v_x, v_y, r]
    u_ref : (TB, 2)  f32   [u0, u1]
    p_ref : (144, 32) bf16 packed MLP parameters (layout above), resident across the grid
    o_ref : (TB, 6)  f32   xtildedot
    """
    cdt = p_ref.dtype  # MXU compute dtype (bf16 by default)

    x = x_ref[...]
    u = u_ref[...]

    # ---- kinematic part (stays f32; sin/cos ride the EUP, muls ride the VPU) ----
    phi = x[:, 2:3]
    v_x = x[:, 3:4]
    v_y = x[:, 4:5]
    r = x[:, 5:6]
    cos_phi = jnp.cos(phi)
    sin_phi = jnp.sin(phi)
    dX = v_x * cos_phi - v_y * sin_phi
    dY = v_x * sin_phi + v_y * cos_phi

    # ---- neural residual: bf16 MXU operands, f32 accumulation ----
    # Static, tile-aligned views into the resident parameter blob.
    w1x = p_ref[R_W1X:R_W1X + STATE_DIM, :]          # (6, 32), rows 0:3 zero
    w1u = p_ref[R_W1U:R_W1U + CONTROL_DIM, :]        # (2, 32)
    b1 = p_ref[R_B1:R_B1 + 1, :]                     # (1, 32)
    w2 = p_ref[R_W2:R_W2 + HIDDEN, :]                # (32, 32)
    b2 = p_ref[R_B2:R_B2 + 1, :]                     # (1, 32)
    w3 = p_ref[R_W3:R_W3 + HIDDEN, 0:STATE_DIM]      # (32, 6), real outputs in cols 3:6
    b3 = p_ref[R_B3:R_B3 + 1, 0:STATE_DIM]           # (1, 6)

    # First layer = x-dot + u-dot (the zero X/Y/phi rows of w1x reproduce
    # net(cat([x[:, 3:], u], -1)) without any concatenation).
    pre1 = (jnp.dot(x.astype(cdt), w1x, preferred_element_type=jnp.float32)
            + jnp.dot(u.astype(cdt), w1u, preferred_element_type=jnp.float32)
            + b1)
    h1 = jnp.tanh(pre1).astype(cdt)
    pre2 = jnp.dot(h1, w2, preferred_element_type=jnp.float32) + b2
    h2 = jnp.tanh(pre2).astype(cdt)
    net6 = jnp.dot(h2, w3, preferred_element_type=jnp.float32) + b3   # (TB, 6), cols 3:6 real

    # ---- single merged store: assemble the (TB, 6) derivative with lane selects ----
    lane = lax.broadcasted_iota(jnp.int32, net6.shape, 1)
    out = jnp.where(lane == 0, dX,
          jnp.where(lane == 1, dY,
          jnp.where(lane == 2, r, net6)))
    o_ref[...] = out.astype(o_ref.dtype)


def pack_params(params, dtype=jnp.bfloat16):
    """Pack (w1,b1,w2,b2,w3,b3) into one 16-row-aligned (144, 32) blob (bf16 by default)."""
    w1, b1, w2, b2, w3, b3 = params
    w1 = jnp.asarray(w1, jnp.float32)
    b1 = jnp.asarray(b1, jnp.float32).reshape(-1)
    w2 = jnp.asarray(w2, jnp.float32)
    b2 = jnp.asarray(b2, jnp.float32).reshape(-1)
    w3 = jnp.asarray(w3, jnp.float32)
    b3 = jnp.asarray(b3, jnp.float32).reshape(-1)

    blob = jnp.zeros((P_ROWS, P_COLS), jnp.float32)
    blob = blob.at[R_W1X + 3:R_W1X + 6, :].set(w1[0:3])       # v_x, v_y, r rows
    blob = blob.at[R_W1U:R_W1U + 2, :].set(w1[3:5])           # u0, u1 rows
    blob = blob.at[R_B1, :].set(b1)
    blob = blob.at[R_W2:R_W2 + HIDDEN, :].set(w2)
    blob = blob.at[R_B2, :].set(b2)
    blob = blob.at[R_W3:R_W3 + HIDDEN, 3:3 + NOUT].set(w3)    # outputs land in cols 3:6
    blob = blob.at[R_B3, 3:3 + NOUT].set(b3)
    return blob.astype(dtype)


def _choose_tile(B, block_b):
    """Batch tile: single tile for small B; >=2 sublane-aligned tiles otherwise (v7x megacore)."""
    if B <= 1024:
        return _round_up(max(B, 1), 8)
    return max(8, min(_round_up(block_b, 8), _round_up(pl.cdiv(B, 2), 8)))


def neural_dyn6(xtilde, utilde, params, *, block_b=8192, compute_dtype=jnp.bfloat16):
    """Returns xtildedot with shape (batch, 6).

    block_b: batch tile (rows) for the grid; 8192 default, sweep up to ~32768.
    compute_dtype: MXU operand dtype (bf16 default; pass jnp.float32 for an exact path).
    """
    assert xtilde.ndim == 2 and utilde.ndim == 2
    assert xtilde.shape[0] == utilde.shape[0]
    assert xtilde.shape[1] == STATE_DIM
    assert utilde.shape[1] == CONTROL_DIM

    B = xtilde.shape[0]
    x = xtilde.astype(jnp.float32)
    u = utilde.astype(jnp.float32)
    blob = pack_params(params, compute_dtype)

    tb = _choose_tile(B, block_b)
    Bp = _round_up(B, tb)
    if Bp != B:
        x = jnp.pad(x, ((0, Bp - B), (0, 0)))
        u = jnp.pad(u, ((0, Bp - B), (0, 0)))

    out = pl.pallas_call(
        neural_dyn6_kernel,
        out_shape=jax.ShapeDtypeStruct((Bp, STATE_DIM), jnp.float32),
        grid_spec=pltpu.PrefetchScalarGridSpec(
            num_scalar_prefetch=0,
            grid=(Bp // tb,),
            in_specs=[
                pl.BlockSpec((tb, STATE_DIM), lambda i: (i, 0)),      # streamed x tile
                pl.BlockSpec((tb, CONTROL_DIM), lambda i: (i, 0)),    # streamed u tile
                pl.BlockSpec((P_ROWS, P_COLS), lambda i: (0, 0)),     # resident weights
            ],
            out_specs=pl.BlockSpec((tb, STATE_DIM), lambda i: (i, 0)),
        ),
        compiler_params=pltpu.CompilerParams(
            dimension_semantics=("parallel",),            # shard batch tiles across v7x cores
            vmem_limit_bytes=48 * 1024 * 1024,            # headroom for block_b up to ~32K
        ),
    )(x, u, blob)
    return out[:B]


def init_params(key):
    """Deterministic MLP parameters: 5 -> 32 -> 32 -> 3 (tanh hidden)."""
    k1, k2, k3 = jax.random.split(key, 3)
    w1 = jax.random.normal(k1, (NIN, HIDDEN), jnp.float32) * 0.3
    b1 = jnp.zeros((1, HIDDEN), jnp.float32)
    w2 = jax.random.normal(k2, (HIDDEN, HIDDEN), jnp.float32) * 0.2
    b2 = jnp.zeros((1, HIDDEN), jnp.float32)
    w3 = jax.random.normal(k3, (HIDDEN, NOUT), jnp.float32) * 0.2
    b3 = jnp.zeros((1, NOUT), jnp.float32)
    return (w1, b1, w2, b2, w3, b3)


def neural_dyn6_ref(xtilde, utilde, params):
    """Pure-JAX f32 reference for correctness check."""
    w1, b1, w2, b2, w3, b3 = params
    phi = xtilde[:, 2:3]
    v_x = xtilde[:, 3:4]
    v_y = xtilde[:, 4:5]
    r = xtilde[:, 5:6]
    net_in = jnp.concatenate([xtilde[:, 3:], utilde], axis=1)
    h1 = jnp.tanh(net_in @ w1 + b1)
    h2 = jnp.tanh(h1 @ w2 + b2)
    net_out = h2 @ w3 + b3
    return jnp.concatenate(
        [v_x * jnp.cos(phi) - v_y * jnp.sin(phi),
         v_x * jnp.sin(phi) + v_y * jnp.cos(phi),
         r,
         net_out], axis=1)


if __name__ == "__main__":
    key = jax.random.PRNGKey(0)
    kp, kdata = jax.random.split(key)
    params = init_params(kp)

    # B=8: small single-tile case.  B=2100: padded, multi-tile ("parallel") grid case,
    # covering the padding / grid paths flagged in the review.
    for B in (8, 2100):
        kx, ku, kdata = jax.random.split(kdata, 3)
        xtilde = jax.random.normal(kx, (B, STATE_DIM), jnp.float32)
        utilde = jax.random.normal(ku, (B, CONTROL_DIM), jnp.float32)

        out = jax.block_until_ready(neural_dyn6(xtilde, utilde, params))
        ref = neural_dyn6_ref(xtilde, utilde, params)

        assert out.shape == (B, STATE_DIM)
        # Kinematic columns are f32 end-to-end.
        assert jnp.allclose(out[:, :3], ref[:, :3], atol=1e-4, rtol=1e-4), "kinematics mismatch"
        # Neural residual uses bf16 MXU operands (f32 accumulation) -> looser tolerance.
        assert jnp.allclose(out[:, 3:], ref[:, 3:], atol=8e-2, rtol=8e-2), "net residual mismatch"

    print("KERNEL_OK")
</pallas_src>

<mosaic_0001>
module attributes {stable_mosaic.version = 11 : i64} {
  func.func @neural_dyn6_kernel(%arg0: i32, %arg1: memref<8x6xf32, #tpu.memory_space<vmem>>, %arg2: memref<8x2xf32, #tpu.memory_space<vmem>>, %arg3: memref<144x32xbf16, #tpu.memory_space<vmem>>, %arg4: memref<8x6xf32, #tpu.memory_space<vmem>>) attributes {dimension_semantics = [#tpu.dimension_semantics<parallel>], iteration_bounds = array<i64: 1>, scalar_prefetch = 0 : i64, scratch_operands = 0 : i64, tpu.core_type = #tpu.core_type<tc>, window_params = [{transform_indices = @transform_0, window_bounds = array<i64: 8, 6>}, {transform_indices = @transform_1, window_bounds = array<i64: 8, 2>}, {pipeline_mode = #tpu.pipeline_mode<synchronous>, transform_indices = @transform_2, window_bounds = array<i64: 144, 32>}, {transform_indices = @transform_3, window_bounds = array<i64: 8, 6>}]} {
    %c0 = arith.constant 0 : index
    %c0_0 = arith.constant 0 : index
    %0 = vector.load %arg1[%c0, %c0_0] : memref<8x6xf32, #tpu.memory_space<vmem>>, vector<8x6xf32>
    %c0_1 = arith.constant 0 : index
    %c0_2 = arith.constant 0 : index
    %1 = vector.load %arg2[%c0_1, %c0_2] : memref<8x2xf32, #tpu.memory_space<vmem>>, vector<8x2xf32>
    %2 = vector.extract_strided_slice %0 {offsets = [0, 2], sizes = [8, 1], strides = [1, 1]} : vector<8x6xf32> to vector<8x1xf32>
    %3 = vector.extract_strided_slice %0 {offsets = [0, 3], sizes = [8, 1], strides = [1, 1]} : vector<8x6xf32> to vector<8x1xf32>
    %4 = vector.extract_strided_slice %0 {offsets = [0, 4], sizes = [8, 1], strides = [1, 1]} : vector<8x6xf32> to vector<8x1xf32>
    %5 = vector.extract_strided_slice %0 {offsets = [0, 5], sizes = [8, 1], strides = [1, 1]} : vector<8x6xf32> to vector<8x1xf32>
    %6 = math.cos %2 : vector<8x1xf32>
    %7 = math.sin %2 : vector<8x1xf32>
    %8 = arith.mulf %3, %6 : vector<8x1xf32>
    %9 = arith.mulf %4, %7 : vector<8x1xf32>
    %10 = arith.subf %8, %9 : vector<8x1xf32>
    %11 = arith.mulf %3, %7 : vector<8x1xf32>
    %12 = arith.mulf %4, %6 : vector<8x1xf32>
    %13 = arith.addf %11, %12 : vector<8x1xf32>
    %c0_3 = arith.constant 0 : index
    %c0_4 = arith.constant 0 : index
    %14 = vector.load %arg3[%c0_3, %c0_4] : memref<144x32xbf16, #tpu.memory_space<vmem>>, vector<6x32xbf16>
    %c16 = arith.constant 16 : index
    %c0_5 = arith.constant 0 : index
    %15 = vector.load %arg3[%c16, %c0_5] : memref<144x32xbf16, #tpu.memory_space<vmem>>, vector<2x32xbf16>
    %c32 = arith.constant 32 : index
    %c0_6 = arith.constant 0 : index
    %16 = vector.load %arg3[%c32, %c0_6] : memref<144x32xbf16, #tpu.memory_space<vmem>>, vector<1x32xbf16>
    %c48 = arith.constant 48 : index
    %c0_7 = arith.constant 0 : index
    %17 = vector.load %arg3[%c48, %c0_7] : memref<144x32xbf16, #tpu.memory_space<vmem>>, vector<32x32xbf16>
    %c80 = arith.constant 80 : index
    %c0_8 = arith.constant 0 : index
    %18 = vector.load %arg3[%c80, %c0_8] : memref<144x32xbf16, #tpu.memory_space<vmem>>, vector<1x32xbf16>
    %c96 = arith.constant 96 : index
    %c0_9 = arith.constant 0 : index
    %19 = vector.load %arg3[%c96, %c0_9] : memref<144x32xbf16, #tpu.memory_space<vmem>>, vector<32x6xbf16>
    %c128 = arith.constant 128 : index
    %c0_10 = arith.constant 0 : index
    %20 = vector.load %arg3[%c128, %c0_10] : memref<144x32xbf16, #tpu.memory_space<vmem>>, vector<1x6xbf16>
    %21 = arith.truncf %0 : vector<8x6xf32> to vector<8x6xbf16>
    %cst = arith.constant dense<0.000000e+00> : vector<8x32xf32>
    %22 = tpu.matmul %21, %14, %cst {dimension_numbers = #tpu.dot_dimension_numbers<[1], [0], [0], [1], [0, 0, 1, 1], [], []>} : vector<8x6xbf16>, vector<6x32xbf16>, vector<8x32xf32> -> vector<8x32xf32>
    %23 = arith.truncf %1 : vector<8x2xf32> to vector<8x2xbf16>
    %cst_11 = arith.constant dense<0.000000e+00> : vector<8x32xf32>
    %24 = tpu.matmul %23, %15, %cst_11 {dimension_numbers = #tpu.dot_dimension_numbers<[1], [0], [0], [1], [0, 0, 1, 1], [], []>} : vector<8x2xbf16>, vector<2x32xbf16>, vector<8x32xf32> -> vector<8x32xf32>
    %25 = arith.addf %22, %24 : vector<8x32xf32>
    %26 = arith.extf %16 : vector<1x32xbf16> to vector<1x32xf32>
    %27 = vector.broadcast %26 : vector<1x32xf32> to vector<8x32xf32>
    %28 = arith.addf %25, %27 : vector<8x32xf32>
    %29 = math.tanh %28 : vector<8x32xf32>
    %30 = arith.truncf %29 : vector<8x32xf32> to vector<8x32xbf16>
    %cst_12 = arith.constant dense<0.000000e+00> : vector<8x32xf32>
    %31 = tpu.matmul %30, %17, %cst_12 {dimension_numbers = #tpu.dot_dimension_numbers<[1], [0], [0], [1], [0, 0, 1, 1], [], []>} : vector<8x32xbf16>, vector<32x32xbf16>, vector<8x32xf32> -> vector<8x32xf32>
    %32 = arith.extf %18 : vector<1x32xbf16> to vector<1x32xf32>
    %33 = vector.broadcast %32 : vector<1x32xf32> to vector<8x32xf32>
    %34 = arith.addf %31, %33 : vector<8x32xf32>
    %35 = math.tanh %34 : vector<8x32xf32>
    %36 = arith.truncf %35 : vector<8x32xf32> to vector<8x32xbf16>
    %cst_13 = arith.constant dense<0.000000e+00> : vector<8x6xf32>
    %37 = tpu.matmul %36, %19, %cst_13 {dimension_numbers = #tpu.dot_dimension_numbers<[1], [0], [0], [1], [0, 0, 1, 1], [], []>} : vector<8x32xbf16>, vector<32x6xbf16>, vector<8x6xf32> -> vector<8x6xf32>
    %38 = arith.extf %20 : vector<1x6xbf16> to vector<1x6xf32>
    %39 = vector.broadcast %38 : vector<1x6xf32> to vector<8x6xf32>
    %40 = arith.addf %37, %39 : vector<8x6xf32>
    %41 = tpu.iota {dimensions = array<i32: 1>} : vector<8x6xi32>
    %c0_i32 = arith.constant 0 : i32
    %42 = vector.broadcast %c0_i32 : i32 to vector<8x6xi32>
    %43 = arith.cmpi eq, %41, %42 : vector<8x6xi32>
    %c1_i32 = arith.constant 1 : i32
    %44 = vector.broadcast %c1_i32 : i32 to vector<8x6xi32>
    %45 = arith.cmpi eq, %41, %44 : vector<8x6xi32>
    %c2_i32 = arith.constant 2 : i32
    %46 = vector.broadcast %c2_i32 : i32 to vector<8x6xi32>
    %47 = arith.cmpi eq, %41, %46 : vector<8x6xi32>
    %48 = vector.shape_cast %5 : vector<8x1xf32> to vector<8x1xf32>
    %49 = vector.broadcast %48 : vector<8x1xf32> to vector<8x6xf32>
    %50 = arith.select %47, %49, %40 : vector<8x6xi1>, vector<8x6xf32>
    %51 = vector.shape_cast %13 : vector<8x1xf32> to vector<8x1xf32>
    %52 = vector.broadcast %51 : vector<8x1xf32> to vector<8x6xf32>
    %53 = arith.select %45, %52, %50 : vector<8x6xi1>, vector<8x6xf32>
    %54 = vector.shape_cast %10 : vector<8x1xf32> to vector<8x1xf32>
    %55 = vector.broadcast %54 : vector<8x1xf32> to vector<8x6xf32>
    %56 = arith.select %43, %55, %53 : vector<8x6xi1>, vector<8x6xf32>
    %c0_14 = arith.constant 0 : index
    %c0_15 = arith.constant 0 : index
    %57 = vector.load %arg4[%c0_14, %c0_15] : memref<8x6xf32, #tpu.memory_space<vmem>>, vector<8x6xf32>
    tpu.vector_store %arg4[%c0_14, %c0_15], %56 {strides = array<i32>} : memref<8x6xf32, #tpu.memory_space<vmem>>, vector<8x6xf32>,
    return
  }
  func.func @transform_0(%arg0: i32) -> (i32, i32) {
    %c0_i32 = arith.constant 0 : i32
    %c0_i32_0 = arith.constant 0 : i32
    return %arg0, %c0_i32 : i32, i32
  }
  func.func @transform_1(%arg0: i32) -> (i32, i32) {
    %c0_i32 = arith.constant 0 : i32
    %c0_i32_0 = arith.constant 0 : i32
    return %arg0, %c0_i32 : i32, i32
  }
  func.func @transform_2(%arg0: i32) -> (i32, i32) {
    %c0_i32 = arith.constant 0 : i32
    %c0_i32_0 = arith.constant 0 : i32
    %c0_i32_1 = arith.constant 0 : i32
    return %c0_i32, %c0_i32_0 : i32, i32
  }
  func.func @transform_3(%arg0: i32) -> (i32, i32) {
    %c0_i32 = arith.constant 0 : i32
    %c0_i32_0 = arith.constant 0 : i32
    return %arg0, %c0_i32 : i32, i32
  }
}

</mosaic_0001>

<bundles_post_ra>
// kernel: tpu_custom_call.1
= control target key start
LH: loop header
LB: loop body
LE: loop exit
PB: predicated region body
PF: predicated region fallthrough
CT: control target
= control target key end

     0   :  { %vm272_vm0 = vcmask 1040384   ;;  %v642_v2 = vmov 0.0   ;;  %vm320_vm1 = vcmask 1042432   ;;  %vm268_vm2 = vcmask 15360   ;;  %s757_s0 = inlined_call_operand.vmem [shape: f32[8,6], index: 0, kind: input, shape index: {}]   ;;  %s758_s1 = inlined_call_operand.vmem [shape: f32[8,2], index: 1, kind: input, shape index: {}]   ;;  %s759_s2 = inlined_call_operand.vmem [shape: bf16[144,32], index: 2, kind: input, shape index: {}]   ;;  %s760_s3 = inlined_call_operand.hbm [shape: f32[8,6], index: 3, kind: output, shape index: {}]  }
   0x1   :  { %v254_v0 = vld [vmem:[%s759_s2 + $0x8] sm:$0x1]  ;;  %v253_v1 = vld [vmem:[%s759_s2] sm:$0x7]  ;;  %559 = vmatprep.subr.bf16.mxu0 %v642_v2  ;;  %565 = vmatprep.subr.bf16.mxu1 %v642_v2  ;;  %vm643_vm3 = vmmov 0   ;;  %vm316_vm4 = vcmask 48128  }
   0x2   :  { %v274_v3 = vsel %vm272_vm0, %v254_v0, 0  ;;  %v17_v4 = vld [vmem:[%s758_s1] sm:$0xff]  ;;  %v322_v6 = vsel %vm320_vm1, %v253_v1, 0  ;;  %561 = vmatprep.mubr.msk.bf16.mxu0 %vm643_vm3, %v642_v2  ;;  %567 = vmatprep.mubr.msk.bf16.mxu1 %vm643_vm3, %v642_v2 }
   0x3   :  { %v690_v5 = vld [vmem:[%s757_s0] sm:$0xff]  ;;  %560 = vmatpush3.bf16.msra.mxu0 %v274_v3  ;;  %v267_v7 = vpack.c.bf16 %v17_v4, %v17_v4  ;;  %566 = vmatpush3.bf16.msra.mxu1 %v322_v6 }
   0x4   :  { %v266_v8 = vpack.c.bf16 %v690_v5, %v690_v5  ;;  %571 = vmatprep.subr.bf16.mxu0 %v642_v2  ;;  %579 = vmatprep.subr.bf16.mxu1 %v642_v2 }
   0x6   :  { %562 = vmatmul.mubr.msk.bf16.vlgmr.msra.gmra.mxu0 %vm268_vm2, %v267_v7 }
   0x7   :  { %8 = vsyncpa [#allocation3], 0  ;;  %568 = vmatmul.mubr.msk.bf16.vlgmr.msra.gmra.mxu1 %vm316_vm4, %v266_v8  ;;  %575 = vmatprep.mubr.msk.bf16.mxu0 %vm643_vm3, %v642_v2  ;;  %v21_v9 = vand.u32 2139095040, %v690_v5  ;;  %v18_v16 = vand.u32 2147483647, %v690_v5  ;;  %v608_v61 = vld [vmem:[%s759_s2 + $0x20] sm:$0xff]  }
   0x8   :  { %583 = vmatprep.mubr.msk.bf16.mxu1 %vm643_vm3, %v642_v2  ;;  %v644_v19 = vmov 683565275   ;;  %v645_v21 = vmov 2102212464   ;;  %v646_v23 = vmov 2475754826   ;;  %572 = vmatpush3.bf16.msra.mxu0 %v608_v61 }
   0x9   :  { %v22_v10 = vshrl.u32 %v21_v9, 23  ;;  %v25_v17 = vand.u32 8388607, %v18_v16  ;;  %v647_v26 = vmov 2131351028   ;;  %573 = vmatprep.subr.bf16.mxu0 %v642_v2  ;;  %v609_v1 = vld [vmem:[%s759_s2 + $0x18] sm:$0xff]  }
   0xa   :  { %v648_v31 = vmov 920167782   ;;  %v649_v38 = vmov 1326507024   ;;  %vm20_vm12 = vcmp.lt.s32.totalorder %v690_v5, 0  ;;  %s650_s22 = smov 2  }
   0xb   :  { %v533_v11 = vadd.s32 4294967169, %v22_v10  ;;  %v26_v29 = vor.u32 8388608, %v25_v17  ;;  %vm19_vm13 = vcmp.le.f32.partialorder %v18_v16, 0.7853982  ;;  %s651_s23 = smov 1   ;;  %s652_s26 = smov 127  }
   0xc   :  { %574 = vmatpush3.bf16.msra.mxu0 %v609_v1  ;;  %s655_s8 = smov [#allocation2]  }
   0xd   :  { %v28_v12 = vadd.s32 1, %v533_v11  ;;  %v66_v44 = vshll.u32 %v26_v29, 8  ;;  %s525_s9 = sshll.u32 %s655_s8, 4  ;;  %s526_s9 = int_to_ptr.vmem [resolvable:$true] %s525_s9 }
   0xe   :  { %p625_p1 = scmp.lt.s32.totalorder %s526_s9, %s526_s9 }
   0xf   :  { %vm29_vm5 = vcmp.gt.s32.totalorder %v28_v12, 0 }
  0x10   :  { %v30_v13 = vsel %vm29_vm5, %v28_v12, 0  ;;  %vm110_vm5 = vweird.f32 %v690_v5 }
  0x11   :  { %v32_v14 = vand.u32 31, %v30_v13  ;;  %v31_v18 = vshrl.u32 %v30_v13, 5 }
  0x13   :  { %v33_v15 = vsub.s32 32, %v32_v14  ;;  %v35_v20 = vshll.u32 %v644_v19, %v32_v14  ;;  %v44_v22 = vshll.u32 %v645_v21, %v32_v14  ;;  %v38_v25 = vshll.u32 %v646_v23, %v32_v14 }
  0x14   :  { %v41_v28 = vshll.u32 %v647_v26, %v32_v14  ;;  %v47_v35 = vshll.u32 %v648_v31, %v32_v14  ;;  %vm50_vm6 = vcmp.lt.s32.totalorder %v31_v18, 1  ;;  %vm52_vm7 = vcmp.lt.s32.totalorder %v31_v18, 3 }
  0x15   :  { %v36_v24 = vshrl.u32 %v646_v23, %v33_v15  ;;  %v39_v27 = vshrl.u32 %v647_v26, %v33_v15  ;;  %v42_v30 = vshrl.u32 %v645_v21, %v33_v15  ;;  %v45_v32 = vshrl.u32 %v648_v31, %v33_v15 }
  0x16   :  { %v48_v39 = vshrl.u32 %v649_v38, %v33_v15  ;;  %vm51_vm8 = vcmp.lt.s32.totalorder %v31_v18, 2  ;;  %vm53_vm9 = vcmp.lt.s32.totalorder %v31_v18, 4  ;;  %v34_v41 = vshrl.u32 %v644_v19, %v33_v15 }
  0x17   :  { %v37_v33 = vor.u32 %v36_v24, %v35_v20  ;;  %v40_v34 = vor.u32 %v39_v27, %v38_v25  ;;  %v43_v36 = vor.u32 %v42_v30, %v41_v28  ;;  %v46_v37 = vor.u32 %v45_v32, %v44_v22 }
  0x18   :  { %v49_v42 = vor.u32 %v48_v39, %v47_v35 }
  0x19   :  { %v58_v40 = vsel %vm50_vm6, %v37_v33, %v40_v34  ;;  %v59_v43 = vsel %vm53_vm9, %v46_v37, 920167782  ;;  %v55_v45 = vsel %vm53_vm9, %v43_v36, 2102212464  ;;  %v62_v47 = vsel %vm50_vm6, %v40_v34, %v43_v36 }
  0x1a   :  { %v60_v46 = vsel %vm52_vm7, %v43_v36, %v59_v43  ;;  %v54_v48 = vsel %vm50_vm6, %v34_v41, %v37_v33  ;;  %v56_v49 = vsel %vm52_vm7, %v40_v34, %v55_v45  ;;  %v63_v51 = vsel %vm53_vm9, %v49_v42, 1326507024 }
  0x1b   :  { %v61_v50 = vsel %vm51_vm8, %v58_v40, %v60_v46  ;;  %v64_v52 = vsel %vm52_vm7, %v46_v37, %v63_v51  ;;  %v57_v55 = vsel %vm51_vm8, %v54_v48, %v56_v49  ;;  %v365_v45 = vlaneseq }
  0x1c   :  { %v706_v53 = vmul.u32.u64.low %v66_v44, %v61_v50  ;;  %v707_v54 = vmul.u32.u64.high %v66_v44, %v61_v50, %v706_v53  ;;  %v65_v56 = vsel %vm51_vm8, %v62_v47, %v64_v52  ;;  %v73_v59 = vmul.u32 %v66_v44, %v57_v55  ;;  %v255_v47 = vld [vmem:[%s759_s2 + $0x10] sm:$0x1] }
  0x1d   :  { %v711_v57 = vmul.u32.u64.low %v66_v44, %v65_v56  ;;  %v712_v58 = vmul.u32.u64.high %v66_v44, %v65_v56, %v711_v57  ;;  %v366_v46 = vshrl.u32 %v365_v45, 7  ;;  %v364_v48 = vunpack.c.l.bf16 %v255_v47 }
  0x1e   :  { %v76_v60 = vadd.s32 1, %v707_v54  ;;  %vm389_vm6 = vcmask 261120  }
  0x1f   :  { %vm75_vm10 = vc.u32 %v712_v58, %v706_v53  ;;  %v74_v11 = vadd.s32 %v706_v53, %v712_v58  ;;  %v367_v49 = vsub.s32 0, %v366_v46 }
  0x20   :  { %v77_v62 = vsel %vm75_vm10, %v76_v60, %v707_v54 }
  0x21   :  { %v78_v63 = vadd.s32 %v77_v62, %v73_v59  ;;  %v368_v51 = vrot.slane %v364_v48, %v367_v49 }
  0x23   :  { %v79_v0 = vadd.s32 536870912, %v78_v63 }
  0x25   :  { %v80_v3 = vshrl.u32 %v79_v0, 30 }
  0x27   :  { %v81_v4 = vshll.u32 %v80_v3, 30  ;;  %v104_v26 = vsub.s32 4, %v80_v3 }
  0x29   :  { %v82_v6 = vsub.s32 %v78_v63, %v81_v4  ;;  %v105_v29 = vsel %vm20_vm12, %v104_v26, %v80_v3  ;;  %v610_v4 = vld [vmem:[%s759_s2 + $0x38] sm:$0xff]  }
  0x2a   :  { %v107_v30 = vsel %vm19_vm13, 0, %v105_v29  ;;  %580 = vmatpush3.bf16.msra.mxu1 %v610_v4 }
  0x2b   :  { %v84_v7 = vsub.s32 0, %v82_v6  ;;  %v214_v31 = vadd.s32 3, %v107_v30  ;;  %v111_v32 = vand.u32 3, %v107_v30  ;;  %581 = vmatprep.subr.bf16.mxu1 %v642_v2 }
  0x2d   :  { %v534_v8 = vmin.u32 %v84_v7, %v82_v6  ;;  %v215_v33 = vand.u32 3, %v214_v31  ;;  %vm116_vm14 = vcmp.eq.s32.totalorder %v111_v32, 2  ;;  %vm113_vm0 = vcmp.eq.s32.totalorder %v111_v32, 0 }
  0x2e   :  { %vm112_vm2 = vcmp.lt.s32.totalorder %v111_v32, 2  ;;  %v653_v7 = vmov 3  }
  0x2f   :  { %v86_v9 = vclz %v534_v8  ;;  %vm220_vm15 = vcmp.eq.s32.totalorder %v215_v33, 2  ;;  %vm217_vm1 = vcmp.eq.s32.totalorder %v215_v33, 0  ;;  %vm216_vm3 = vcmp.lt.s32.totalorder %v215_v33, 2  ;;  %606 = vset.pattern.permute.xlu1 %v653_v7 }
  0x30   :  { %v654_v8 = vmov 5  }
  0x31   :  { %v535_v10 = vadd.s32 4294967294, %v86_v9  ;;  %605 = vset.pattern.permute.xlu0 %v654_v8 }
  0x33   :  { %vm536_vm11 = vcmp.lt.s32.totalorder %v535_v10, 0 }
  0x34   :  { %v89_v12 = vsel %vm536_vm11, 0, %v535_v10 }
  0x35   :  { %v90_v13 = vsub.s32 32, %v89_v12  ;;  %v91_v14 = vshll.u32 %v82_v6, %v89_v12  ;;  %v94_v15 = vsub.s32 4294967266, %v89_v12  ;;  %v611_v6 = vld [vmem:[%s759_s2 + $0x30] sm:$0xff]  }
  0x36   :  { %582 = vmatpush3.bf16.msra.mxu1 %v611_v6 }
  0x37   :  { %v92_v17 = vshrl.u32 %v74_v11, %v90_v13  ;;  %v95_v18 = vadd.s32 127, %v94_v15 }
  0x39   :  { %v93_v19 = vor.u32 %v92_v17, %v91_v14  ;;  %v96_v20 = vshll.u32 %v95_v18, 23  ;;  %v260_v17 = vld [vmem:[%s759_s2 + $0x28] sm:$0x1] }
  0x3a   :  { %v372_v18 = vunpack.c.l.bf16 %v260_v17 }
  0x3b   :  { %v97_v21 = vor.u32 4788187, %v96_v20  ;;  %v100_v22 = vcvt.s32.f32 %v93_v19 }
  0x3c   :  { %v376_v19 = vrot.slane %v372_v18, %v367_v49 }
  0x3d   :  { %v98_v23 = vand.u32 2147483647, %v97_v21 }
  0x3f   :  { %v101_v24 = vmul.f32 %v100_v22, %v98_v23 }
  0x41   :  { %v102_v25 = vxor.u32 2147483648, %v101_v24 }
  0x43   :  { %v103_v27 = vsel %vm20_vm12, %v102_v25, %v101_v24 }
  0x44   :  { %v106_v28 = vsel %vm19_vm13, %v690_v5, %v103_v27 }
  0x45   :  { %612 = vcosq.f32 %v106_v28 }
  0x46   :  { %614 = vsinq.f32 %v106_v28  ;;  %v496_v28 = vand.u32 127, %v365_v45 }
  0x48   :  { %vm499_vm7 = vcmp.eq.s32.totalorder %v496_v28, 2  ;;  %vm498_vm8 = vcmp.eq.s32.totalorder %v496_v28, 1  ;;  %vm497_vm9 = vcmp.eq.s32.totalorder %v496_v28, 0 }
  0x52   :  { %v613_v34 = vpop.eup %612 }
  0x53   :  { %v615_v35 = vpop.eup %614  ;;  %v117_v36 = vxor.u32 2147483648, %v613_v34 }
  0x54   :  { %v114_v16 = vxor.u32 2147483648, %v615_v35 }
  0x55   :  { %v118_v37 = vsel %vm116_vm14, %v117_v36, %v615_v35  ;;  %v222_v38 = vsel %vm220_vm15, %v117_v36, %v615_v35 }
  0x56   :  { %v115_v39 = vsel %vm113_vm0, %v613_v34, %v114_v16  ;;  %v219_v40 = vsel %vm217_vm1, %v613_v34, %v114_v16 }
  0x57   :  { %v119_v41 = vsel %vm112_vm2, %v115_v39, %v118_v37  ;;  %v223_v42 = vsel %vm216_vm3, %v219_v40, %v222_v38 }
  0x58   :  { %v120_v43 = vsel %vm110_vm5, nan, %v119_v41  ;;  %v224_v44 = vsel %vm110_vm5, nan, %v223_v42 }
  0x59   :  { %244 = vrot.lane.b32.xlu0 %v120_v43, %s650_s22  ;;  %240 = vrot.lane.b32.xlu1 %v224_v44, %s651_s23 }
  0x5d   :  { %231 = vrot.lane.b32.xlu0 %v224_v44, %s650_s22  ;;  %226 = vrot.lane.b32.xlu1 %v120_v43, %s651_s23 }
  0xc6   :  { %v310_v50 = vpop.f32.mrf.mxu0 }
  0xc7   :  { %v358_v52 = vpop.f32.mrf.mxu1 }
  0xc8   :  { %v359_v53 = vadd.f32 %v358_v52, %v310_v50  ;;  %v563_v54 = vpop.f32.mrf.mxu0 }
  0xc9   :  { %v569_v55 = vpop.f32.mrf.mxu1 }
  0xca   :  { %v369_v56 = vadd.f32 %v368_v51, %v359_v53  ;;  %v313_v57 = vpop.f32.mrf.mxu0 }
  0xcb   :  { %v361_v58 = vpop.f32.mrf.mxu1  ;;  %v245_v63 = vpop.permute.xlu0 %244 }
  0xcc   :  { %616 = vtanh.f32 %v369_v56  ;;  %v564_v59 = vpop.f32.mrf.mxu0  ;;  %v247_v0 = vmul.f32 %v245_v63, %v690_v5  ;;  %v241_v9 = vpop.permute.xlu1 %240 }
  0xcd   :  { %v570_v60 = vpop.f32.mrf.mxu1  ;;  %v243_v10 = vmul.f32 %v241_v9, %v690_v5 }
  0xce   :  { %249 = vrot.lane.b32.xlu0 %v247_v0, %s652_s26 }
  0xcf   :  { %v232_v1 = vpop.permute.xlu0 %231 }
  0xd0   :  { %v234_v3 = vmul.f32 %v232_v1, %v690_v5  ;;  %v227_v11 = vpop.permute.xlu1 %226 }
  0xd1   :  { %v229_v13 = vmul.f32 %v227_v11, %v690_v5 }
  0xd2   :  { %236 = vrot.lane.b32.xlu1 %v234_v3, %s652_s26  ;;  %502 = vperm.xlu0 %605, %v690_v5   ;;  %v265_v5 = vld [vmem:[%s759_s2 + $0x40] sm:$0x1]  ;;  %s620_s2 = scalar_lea.vmem %s526_s9, 128 }
  0xd3   :  { %v435_v27 = vunpack.c.l.bf16 %v265_v5  ;;  %p621_p0 = scmp.ne.s32.totalorder %s526_s9, %s620_s2  ;;  %p626_p2 = scmp.lt.s32.totalorder %s620_s2, %s620_s2 }
  0xd5   :  { %v439_v29 = vrot.slane %v435_v27, %v367_v49  ;;  %p627_p3 = por %p626_p2, %p625_p1 }
  0xd6   :  { %607 = vset.pattern.permute.xlu0 %v653_v7 }
  0xd7   :  { %p628_p4 = pnand %p627_p3, %p621_p0 }
  0xd9   :  { %v617_v61 = vpop.eup %616 }
  0xda   :  { %v371_v62 = vpack.c.bf16 %v617_v61, %v617_v61 }
  0xdc   :  { %576 = vmatmul.mubr.msk.bf16.vlgmr.msra.gmra.mxu0 %vm389_vm6, %v371_v62 }
 0x140   :  { %v250_v12 = vpop.permute.xlu0 %249 }
 0x141   :  { %v252_v2 = vadd.f32 %v250_v12, %v243_v10 }
 0x143   :  { %508 = vperm.xlu1 %606, %v252_v2  }
 0x144   :  { %v237_v14 = vpop.permute.xlu1 %236 }
 0x145   :  { %v239_v15 = vsub.f32 %v229_v13, %v237_v14 }
 0x147   :  { %514 = vperm.xlu1 %606, %v239_v15  }
 0x14d   :  { %v503_v32 = vpop.permute.xlu0 %502 }
 0x19c   :  { %v427_v20 = vpop.f32.mrf.mxu0 }
 0x19d   :  { %v428_v21 = vadd.f32 %v427_v20, %v376_v19 }
 0x19e   :  { %v577_v22 = vpop.f32.mrf.mxu0 }
 0x19f   :  { %618 = vtanh.f32 %v428_v21 }
 0x1a0   :  { %v430_v23 = vpop.f32.mrf.mxu0 }
 0x1a2   :  { %v578_v24 = vpop.f32.mrf.mxu0 }
 0x1ac   :  { %v619_v25 = vpop.eup %618 }
 0x1ad   :  { %v434_v26 = vpack.c.bf16 %v619_v25, %v619_v25 }
 0x1af   :  { %584 = vmatmul.mubr.msk.bf16.vlgmr.msra.gmra.mxu1 %vm389_vm6, %v434_v26 }
 0x1be   :  { %v509_v30 = vpop.permute.xlu1 %508 }
 0x1c2   :  { %v515_v36 = vpop.permute.xlu1 %514 }
 0x26f   :  { %v489_v31 = vpop.f32.mrf.mxu1 }
 0x270   :  { %v490_v33 = vadd.f32 %v489_v31, %v439_v29 }
 0x271   :  { %v585_v34 = vpop.f32.mrf.mxu1 }
 0x272   :  { %v505_v35 = vsel %vm499_vm7, %v503_v32, %v490_v33 }
 0x273   :  { %v511_v16 = vsel %vm498_vm8, %v509_v30, %v505_v35  ;;  %v492_v37 = vpop.f32.mrf.mxu1 }
 0x274   :  { %v517_v38 = vsel %vm497_vm9, %v515_v36, %v511_v16 }
 0x275   :  { %v586_v39 = vpop.f32.mrf.mxu1  ;;  %518 = vst.msk [vmem:[#allocation2] sm:$0xff] %vm316_vm4, %v517_v38 }
 0x276   :  { %631 = shalt.err (!%p628_p4)
}
 0x277   :  { %528 = dma.vmem_to_hbm [thread:$0]  %s526_s9, 128, %s760_s3, [#allocation3]  }
 0x278   :  { %640 = dma.done.wait [#allocation3], 128  }
 0x279   :  { %641 = vsyncadd [#allocation3], 4294967168 }
 0x27a   :  { %532 = vsyncpa [#allocation3], 1 }

</bundles_post_ra>
